<compile_context>
chip_gen: v6e
topology: v6e:2x2x1
jax: 0.10.0
libtpu: 0.0.40
codegen_flags: <defaults>
</compile_context>

<pallas_src>
import functools

import jax
import jax.numpy as jnp
from jax import lax
from jax.experimental import pallas as pl
from jax.experimental.pallas import tpu as pltpu

BN_EPS = 1e-5


def _round_up(n, m):
    return ((n + m - 1) // m) * m


# -----------------------------------------------------------------------------
# Parameter init (PyTorch nn.Linear-style), kept in unpacked form for the
# pure-JAX reference; packing/folding happens in pack_params().
# -----------------------------------------------------------------------------
def _linear_init(key, fan_in, fan_out):
    kw, kb = jax.random.split(key)
    bound = 1.0 / jnp.sqrt(jnp.float32(fan_in))
    w = jax.random.uniform(kw, (fan_in, fan_out), jnp.float32, -bound, bound)
    b = jax.random.uniform(kb, (1, fan_out), jnp.float32, -bound, bound)
    return w, b


def init_params(key, input_size, size_hidden, output_size):
    k1, k2, k3, kv, ka = jax.random.split(key, 5)
    w1, b1 = _linear_init(k1, input_size, size_hidden)
    w2, b2 = _linear_init(k2, size_hidden, size_hidden)
    w3, b3 = _linear_init(k3, size_hidden, size_hidden)
    wv, bv = _linear_init(kv, size_hidden, 1)
    wa, ba = _linear_init(ka, size_hidden, output_size)
    return {
        "w1": w1, "b1": b1,
        "g1": jnp.ones((1, size_hidden), jnp.float32),
        "beta1": jnp.zeros((1, size_hidden), jnp.float32),
        "w2": w2, "b2": b2,
        "g2": jnp.ones((1, size_hidden), jnp.float32),
        "beta2": jnp.zeros((1, size_hidden), jnp.float32),
        "w3": w3, "b3": b3,
        "wv": wv, "bv": bv,
        "wa": wa, "ba": ba,
    }


# -----------------------------------------------------------------------------
# Fold fc3 + heads + dueling combine, and pack EVERYTHING into ONE slab:
#   rows [0, d_in)                 : w1                (d_in, H)
#   rows [off_w2, off_w2 + H)      : w2                (H, H)
#   rows [off_w3, off_w3 + H)      : w_eff (cols 0:A)  (H, A)
#   rows [off_rows, off_rows + 8)  : g1 / beta1 / g2 / beta2 / b_eff
# -----------------------------------------------------------------------------
def pack_params(params, input_size, size_hidden, output_size):
    d_in, H, A = input_size, size_hidden, output_size
    assert A <= H, "row packing assumes output_size <= size_hidden"

    # ---- dueling head fold (exact algebra) ----------------------------------
    wa, ba = params["wa"], params["ba"]          # (H, A), (1, A)
    wv, bv = params["wv"], params["bv"]          # (H, 1), (1, 1)
    w3, b3 = params["w3"], params["b3"]          # (H, H), (1, H)

    w_head = wa - jnp.mean(wa, axis=1, keepdims=True) + wv       # (H, A)
    b_head = ba - jnp.mean(ba, axis=1, keepdims=True) + bv       # (1, A)
    w_eff = w3 @ w_head                                          # (H, A)
    b_eff = b3 @ w_head + b_head                                 # (1, A)

    off_w2 = _round_up(d_in, 8)
    off_w3 = off_w2 + _round_up(H, 8)
    off_rows = off_w3 + _round_up(H, 8)
    total_rows = off_rows + 8

    slab = jnp.zeros((total_rows, H), jnp.float32)
    slab = slab.at[0:d_in, :].set(params["w1"])
    slab = slab.at[off_w2:off_w2 + H, :].set(params["w2"])
    slab = slab.at[off_w3:off_w3 + H, 0:A].set(w_eff)
    slab = slab.at[off_rows + 0:off_rows + 1, :].set(params["g1"])
    slab = slab.at[off_rows + 1:off_rows + 2, :].set(params["beta1"])
    slab = slab.at[off_rows + 2:off_rows + 3, :].set(params["g2"])
    slab = slab.at[off_rows + 3:off_rows + 4, :].set(params["beta2"])
    slab = slab.at[off_rows + 4:off_rows + 5, 0:A].set(b_eff)

    return {
        "w_slab": slab,
        "d_in": d_in, "H": H, "A": A,
        "off_w2": off_w2, "off_w3": off_w3, "off_rows": off_rows,
    }


# -----------------------------------------------------------------------------
# Pallas kernel + wrapper
# -----------------------------------------------------------------------------
def _dqn_kernel(x_ref, w_ref, out_ref, *, d_in, H, A, off_w2, off_w3, off_rows):
    xin = x_ref[...].astype(jnp.float32)                  # (B, d_in)

    # Static slices of the single param slab (free — no data movement).
    w1 = w_ref[0:d_in, :]                                 # (d_in, H)
    w2 = w_ref[off_w2:off_w2 + H, :]                      # (H, H)
    w_eff = w_ref[off_w3:off_w3 + H, 0:A]                 # (H, A)
    g1 = w_ref[off_rows + 0:off_rows + 1, :]              # (1, H)
    beta1 = w_ref[off_rows + 1:off_rows + 2, :]
    g2 = w_ref[off_rows + 2:off_rows + 3, :]
    beta2 = w_ref[off_rows + 3:off_rows + 4, :]
    b_eff = w_ref[off_rows + 4:off_rows + 5, 0:A]         # (1, A)

    # ---- fc1 -> bn1 -> relu (linear bias cancels inside train-mode BN) ------
    h = jnp.dot(xin, w1, preferred_element_type=jnp.float32)       # (B, H)
    mu = jnp.mean(h, axis=0, keepdims=True)                        # (1, H)
    c = h - mu
    var = jnp.mean(c * c, axis=0, keepdims=True)                   # (1, H)
    scale = g1 * lax.rsqrt(var + BN_EPS)                           # (1, H)
    h = jnp.maximum(c * scale + beta1, 0.0)

    # ---- fc2 -> bn2 -> relu ---------------------------------------------------
    h = jnp.dot(h, w2, preferred_element_type=jnp.float32)         # (B, H)
    mu = jnp.mean(h, axis=0, keepdims=True)
    c = h - mu
    var = jnp.mean(c * c, axis=0, keepdims=True)
    scale = g2 * lax.rsqrt(var + BN_EPS)
    h = jnp.maximum(c * scale + beta2, 0.0)

    # ---- folded fc3 + value/advantage heads + dueling combine -----------------
    out_ref[...] = jnp.dot(h, w_eff, preferred_element_type=jnp.float32) + b_eff


def duelling_dqn_forward(x, packed):
    """x: (T, B, input_size) or (B, input_size), f32. packed: pack_params()."""
    d_in, H, A = packed["d_in"], packed["H"], packed["A"]
    off_w2, off_w3, off_rows = packed["off_w2"], packed["off_w3"], packed["off_rows"]
    slab = packed["w_slab"]

    squeeze_out = False
    if x.ndim == 2:
        x = x[None]
        squeeze_out = True
    T, B, _ = x.shape

    kernel = functools.partial(
        _dqn_kernel, d_in=d_in, H=H, A=A,
        off_w2=off_w2, off_w3=off_w3, off_rows=off_rows)

    flops = int(T * (2 * B * d_in * H + 2 * B * H * H + 2 * B * H * A + 12 * B * H))
    bytes_accessed = int(x.size * 4 + slab.size * 4 + T * B * A * 4)

    out = pl.pallas_call(
        kernel,
        out_shape=jax.ShapeDtypeStruct((T, B, A), jnp.float32),
        grid=(T,),
        in_specs=[
            # Per-step batch; leading grid dim squeezed out of the kernel Ref.
            pl.BlockSpec((None, B, d_in), lambda t: (t, 0, 0)),
            # Single param slab, grid-invariant -> loaded once, VMEM-resident.
            pl.BlockSpec(slab.shape, lambda t: (0, 0)),
        ],
        out_specs=pl.BlockSpec((None, B, A), lambda t: (t, 0, 0)),
        compiler_params=pltpu.CompilerParams(
            dimension_semantics=("parallel",)),   # v7x: shard T over both TCs
        cost_estimate=pl.CostEstimate(
            flops=flops, bytes_accessed=bytes_accessed, transcendentals=0),
    )(x, slab)

    return out[0] if squeeze_out else out


# -----------------------------------------------------------------------------
# Pure-JAX reference (exact PyTorch math, unfolded) for sanity checking.
# -----------------------------------------------------------------------------
def _reference_forward(x, p):
    x = x.astype(jnp.float32)

    def bn(h, g, beta):
        mu = jnp.mean(h, axis=0, keepdims=True)
        var = jnp.mean((h - mu) ** 2, axis=0, keepdims=True)
        return (h - mu) / jnp.sqrt(var + BN_EPS) * g + beta

    h1 = jnp.maximum(bn(x @ p["w1"] + p["b1"], p["g1"], p["beta1"]), 0.0)
    h2 = jnp.maximum(bn(h1 @ p["w2"] + p["b2"], p["g2"], p["beta2"]), 0.0)
    o = h2 @ p["w3"] + p["b3"]
    adv = o @ p["wa"] + p["ba"]
    val = o @ p["wv"] + p["bv"]
    return val + adv - jnp.mean(adv, axis=1, keepdims=True)


if __name__ == "__main__":
    input_size, size_hidden, output_size = 16, 32, 4  # output must be 4 (expand(-1,4))
    T, batch = 4, 8                                    # T stacked forward calls

    key = jax.random.PRNGKey(0)
    kx, kp = jax.random.split(key)
    x = jax.random.normal(kx, (T, batch, input_size), jnp.float32)
    params = init_params(kp, input_size, size_hidden, output_size)
    packed = pack_params(params, input_size, size_hidden, output_size)

    out = duelling_dqn_forward(x, packed)
    out = jax.block_until_ready(out)

    ref = jax.vmap(lambda xb: _reference_forward(xb, params))(x)
    assert out.shape == (T, batch, output_size)
    assert jnp.allclose(out, ref, atol=1e-4, rtol=1e-4), "mismatch vs JAX reference"

    # Single-batch (T=1) path still works.
    out1 = jax.block_until_ready(duelling_dqn_forward(x[0], packed))
    assert out1.shape == (batch, output_size)
    assert jnp.allclose(out1, ref[0], atol=1e-4, rtol=1e-4), "mismatch (2-D path)"

    print("KERNEL_OK")
</pallas_src>

<mosaic_0001>
module attributes {stable_mosaic.version = 11 : i64} {
  func.func @_dqn_kernel(%arg0: i32, %arg1: memref<1x8x16xf32, #tpu.memory_space<vmem>>, %arg2: memref<88x32xf32, #tpu.memory_space<vmem>>, %arg3: memref<1x8x4xf32, #tpu.memory_space<vmem>>) attributes {dimension_semantics = [#tpu.dimension_semantics<parallel>], iteration_bounds = array<i64: 4>, scalar_prefetch = 0 : i64, scratch_operands = 0 : i64, tpu.core_type = #tpu.core_type<tc>, window_params = [{transform_indices = @transform_0, window_bounds = array<i64: 1, 8, 16>}, {pipeline_mode = #tpu.pipeline_mode<synchronous>, transform_indices = @transform_1, window_bounds = array<i64: 88, 32>}, {transform_indices = @transform_2, window_bounds = array<i64: 1, 8, 4>}]} {
    %c0 = arith.constant 0 : index
    %c0_0 = arith.constant 0 : index
    %c0_1 = arith.constant 0 : index
    %0 = vector.load %arg1[%c0, %c0_0, %c0_1] : memref<1x8x16xf32, #tpu.memory_space<vmem>>, vector<1x8x16xf32>
    %1 = vector.shape_cast %0 : vector<1x8x16xf32> to vector<8x16xf32>
    %c0_2 = arith.constant 0 : index
    %c0_3 = arith.constant 0 : index
    %2 = vector.load %arg2[%c0_2, %c0_3] : memref<88x32xf32, #tpu.memory_space<vmem>>, vector<16x32xf32>
    %c16 = arith.constant 16 : index
    %c0_4 = arith.constant 0 : index
    %3 = vector.load %arg2[%c16, %c0_4] : memref<88x32xf32, #tpu.memory_space<vmem>>, vector<32x32xf32>
    %c48 = arith.constant 48 : index
    %c0_5 = arith.constant 0 : index
    %4 = vector.load %arg2[%c48, %c0_5] : memref<88x32xf32, #tpu.memory_space<vmem>>, vector<32x4xf32>
    %c80 = arith.constant 80 : index
    %c0_6 = arith.constant 0 : index
    %5 = vector.load %arg2[%c80, %c0_6] : memref<88x32xf32, #tpu.memory_space<vmem>>, vector<1x32xf32>
    %c81 = arith.constant 81 : index
    %c0_7 = arith.constant 0 : index
    %6 = vector.load %arg2[%c81, %c0_7] : memref<88x32xf32, #tpu.memory_space<vmem>>, vector<1x32xf32>
    %c82 = arith.constant 82 : index
    %c0_8 = arith.constant 0 : index
    %7 = vector.load %arg2[%c82, %c0_8] : memref<88x32xf32, #tpu.memory_space<vmem>>, vector<1x32xf32>
    %c83 = arith.constant 83 : index
    %c0_9 = arith.constant 0 : index
    %8 = vector.load %arg2[%c83, %c0_9] : memref<88x32xf32, #tpu.memory_space<vmem>>, vector<1x32xf32>
    %c84 = arith.constant 84 : index
    %c0_10 = arith.constant 0 : index
    %9 = vector.load %arg2[%c84, %c0_10] : memref<88x32xf32, #tpu.memory_space<vmem>>, vector<1x4xf32>
    %cst = arith.constant dense<0.000000e+00> : vector<8x32xf32>
    %10 = tpu.matmul %1, %2, %cst {dimension_numbers = #tpu.dot_dimension_numbers<[1], [0], [0], [1], [0, 0, 1, 1], [], []>} : vector<8x16xf32>, vector<16x32xf32>, vector<8x32xf32> -> vector<8x32xf32>
    %cst_11 = arith.constant dense<0.000000e+00> : vector<32xf32>
    %11 = vector.multi_reduction <add>, %10, %cst_11 [0] : vector<8x32xf32> to vector<32xf32>
    %12 = vector.shape_cast %11 : vector<32xf32> to vector<1x32xf32>
    %cst_12 = arith.constant 8.000000e+00 : f32
    %13 = vector.broadcast %cst_12 : f32 to vector<1x32xf32>
    %14 = arith.divf %12, %13 : vector<1x32xf32>
    %15 = vector.broadcast %14 : vector<1x32xf32> to vector<8x32xf32>
    %16 = arith.subf %10, %15 : vector<8x32xf32>
    %17 = arith.mulf %16, %16 : vector<8x32xf32>
    %cst_13 = arith.constant dense<0.000000e+00> : vector<32xf32>
    %18 = vector.multi_reduction <add>, %17, %cst_13 [0] : vector<8x32xf32> to vector<32xf32>
    %19 = vector.shape_cast %18 : vector<32xf32> to vector<1x32xf32>
    %cst_14 = arith.constant 8.000000e+00 : f32
    %20 = vector.broadcast %cst_14 : f32 to vector<1x32xf32>
    %21 = arith.divf %19, %20 : vector<1x32xf32>
    %cst_15 = arith.constant 9.99999974E-6 : f32
    %22 = vector.broadcast %cst_15 : f32 to vector<1x32xf32>
    %23 = arith.addf %21, %22 : vector<1x32xf32>
    %24 = math.rsqrt %23 : vector<1x32xf32>
    %25 = arith.mulf %5, %24 : vector<1x32xf32>
    %26 = vector.broadcast %25 : vector<1x32xf32> to vector<8x32xf32>
    %27 = arith.mulf %16, %26 : vector<8x32xf32>
    %28 = vector.broadcast %6 : vector<1x32xf32> to vector<8x32xf32>
    %29 = arith.addf %27, %28 : vector<8x32xf32>
    %cst_16 = arith.constant 0.000000e+00 : f32
    %30 = vector.broadcast %cst_16 : f32 to vector<8x32xf32>
    %31 = arith.maximumf %29, %30 : vector<8x32xf32>
    %cst_17 = arith.constant dense<0.000000e+00> : vector<8x32xf32>
    %32 = tpu.matmul %31, %3, %cst_17 {dimension_numbers = #tpu.dot_dimension_numbers<[1], [0], [0], [1], [0, 0, 1, 1], [], []>} : vector<8x32xf32>, vector<32x32xf32>, vector<8x32xf32> -> vector<8x32xf32>
    %cst_18 = arith.constant dense<0.000000e+00> : vector<32xf32>
    %33 = vector.multi_reduction <add>, %32, %cst_18 [0] : vector<8x32xf32> to vector<32xf32>
    %34 = vector.shape_cast %33 : vector<32xf32> to vector<1x32xf32>
    %cst_19 = arith.constant 8.000000e+00 : f32
    %35 = vector.broadcast %cst_19 : f32 to vector<1x32xf32>
    %36 = arith.divf %34, %35 : vector<1x32xf32>
    %37 = vector.broadcast %36 : vector<1x32xf32> to vector<8x32xf32>
    %38 = arith.subf %32, %37 : vector<8x32xf32>
    %39 = arith.mulf %38, %38 : vector<8x32xf32>
    %cst_20 = arith.constant dense<0.000000e+00> : vector<32xf32>
    %40 = vector.multi_reduction <add>, %39, %cst_20 [0] : vector<8x32xf32> to vector<32xf32>
    %41 = vector.shape_cast %40 : vector<32xf32> to vector<1x32xf32>
    %cst_21 = arith.constant 8.000000e+00 : f32
    %42 = vector.broadcast %cst_21 : f32 to vector<1x32xf32>
    %43 = arith.divf %41, %42 : vector<1x32xf32>
    %cst_22 = arith.constant 9.99999974E-6 : f32
    %44 = vector.broadcast %cst_22 : f32 to vector<1x32xf32>
    %45 = arith.addf %43, %44 : vector<1x32xf32>
    %46 = math.rsqrt %45 : vector<1x32xf32>
    %47 = arith.mulf %7, %46 : vector<1x32xf32>
    %48 = vector.broadcast %47 : vector<1x32xf32> to vector<8x32xf32>
    %49 = arith.mulf %38, %48 : vector<8x32xf32>
    %50 = vector.broadcast %8 : vector<1x32xf32> to vector<8x32xf32>
    %51 = arith.addf %49, %50 : vector<8x32xf32>
    %cst_23 = arith.constant 0.000000e+00 : f32
    %52 = vector.broadcast %cst_23 : f32 to vector<8x32xf32>
    %53 = arith.maximumf %51, %52 : vector<8x32xf32>
    %cst_24 = arith.constant dense<0.000000e+00> : vector<8x4xf32>
    %54 = tpu.matmul %53, %4, %cst_24 {dimension_numbers = #tpu.dot_dimension_numbers<[1], [0], [0], [1], [0, 0, 1, 1], [], []>} : vector<8x32xf32>, vector<32x4xf32>, vector<8x4xf32> -> vector<8x4xf32>
    %55 = vector.broadcast %9 : vector<1x4xf32> to vector<8x4xf32>
    %56 = arith.addf %54, %55 : vector<8x4xf32>
    %c0_25 = arith.constant 0 : index
    %c0_26 = arith.constant 0 : index
    %c0_27 = arith.constant 0 : index
    %57 = vector.load %arg3[%c0_25, %c0_26, %c0_27] : memref<1x8x4xf32, #tpu.memory_space<vmem>>, vector<1x8x4xf32>
    %58 = vector.shape_cast %57 : vector<1x8x4xf32> to vector<8x4xf32>
    %59 = vector.shape_cast %56 : vector<8x4xf32> to vector<1x8x4xf32>
    tpu.vector_store %arg3[%c0_25, %c0_26, %c0_27], %59 {strides = array<i32>} : memref<1x8x4xf32, #tpu.memory_space<vmem>>, vector<1x8x4xf32>,
    return
  }
  func.func @transform_0(%arg0: i32) -> (i32, i32, i32) {
    %c0_i32 = arith.constant 0 : i32
    %c0_i32_0 = arith.constant 0 : i32
    %c0_i32_1 = arith.constant 0 : i32
    return %arg0, %c0_i32, %c0_i32_0 : i32, i32, i32
  }
  func.func @transform_1(%arg0: i32) -> (i32, i32) {
    %c0_i32 = arith.constant 0 : i32
    %c0_i32_0 = arith.constant 0 : i32
    %c0_i32_1 = arith.constant 0 : i32
    return %c0_i32, %c0_i32_0 : i32, i32
  }
  func.func @transform_2(%arg0: i32) -> (i32, i32, i32) {
    %c0_i32 = arith.constant 0 : i32
    %c0_i32_0 = arith.constant 0 : i32
    %c0_i32_1 = arith.constant 0 : i32
    return %arg0, %c0_i32, %c0_i32_0 : i32, i32, i32
  }
}

</mosaic_0001>

<bundles_post_ra>
// kernel: tpu_custom_call.1
= control target key start
LH: loop header
LB: loop body
LE: loop exit
PB: predicated region body
PF: predicated region fallthrough
CT: control target
= control target key end

     0   :  { %s596_s9 = smov 0   ;;  %s684_s0 = inlined_call_operand.vmem [shape: f32[4,8,16], index: 0, kind: input, shape index: {}]   ;;  %s685_s1 = inlined_call_operand.vmem [shape: f32[88,32], index: 1, kind: input, shape index: {}]   ;;  %s686_s2 = inlined_call_operand.vmem [shape: f32[4,8,4], index: 2, kind: output, shape index: {}]  }
   0x1 LB: > { %s500_s10 = sadd.s32 4294967295, %s577_s9   ;;  %p504_p0 = scmp.ge.s32.totalorder %s577_s9, 1  ;;  %s577_s9 = sphi %s596_s9, %s12_s9  }
   0x2   : > { %p111_p1 = scmp.lt.s32.totalorder %s577_s9, 5 }
   0x4   : > { %p112_p2 = pnand %p504_p0, %p111_p1 }
   0x5   : > { %p131_p3 = scmp.lt.s32.totalorder (!%p112_p2), %s500_s10, 3 }
   0x6   : > { %115 = sbr.rel (%p112_p2) target bundleno = 718 (0x2ce), region = 28 }
   0xb   : > { %v141_v0 = vld [vmem:[%s685_s1 + $0x8] sm:$0xff]  ;;  %v579_v1 = vmov 0.0   ;;  %v140_v2 = vld [vmem:[%s685_s1] sm:$0xff]  ;;  %vm580_vm0 = vmmov 0   ;;  %s688_s10 = smov (!%p131_p3, %s500_s10), 3  ;;  %vm155_vm1 = vcmask 130048   ;;  %v252_v29 = vlaneseq }
   0xc   : > { %528 = vmatprep.subr.mxu0 %v579_v1  ;;  %532 = vmatprep.mubr.msk.f32.mxu0 %vm580_vm0, %v579_v1  ;;  %s505_s15 = sshll.u32 %s688_s10, 3  ;;  %v145_v4 = vld [vmem:[%s685_s1 + $0x28] sm:$0xff]  ;;  %v144_v5 = vld [vmem:[%s685_s1 + $0x20] sm:$0xff]  ;;  %v143_v6 = vld [vmem:[%s685_s1 + $0x18] sm:$0xff]  ;;  %vm229_vm2 = vcmask 261120   ;;  %vm445_vm3 = vcmask 31744  }
   0xd   : > { %529 = vmatpush3.msra.mxu0 %v141_v0  ;;  %535 = vmatprep.subr.mxu1 %v579_v1  ;;  %s134_s18 = scalar_lea.vmem %s684_s0, %s505_s15  ;;  %v142_v7 = vld [vmem:[%s685_s1 + $0x10] sm:$0xff]  ;;  %v253_v30 = vshrl.u32 %v252_v29, 7  ;;  %v149_v40 = vld [vmem:[%s685_s1 + $0x48] sm:$0xff]  ;;  %v148_v41 = vld [vmem:[%s685_s1 + $0x40] sm:$0xff]  ;;  %s138_s22 = scalar_lea.vmem %s686_s2, %s505_s15 }
   0xe   : > { %530 = vmatprep.subr.mxu0 %v579_v1  ;;  %543 = vmatprep.mubr.msk.f32.mxu1 %vm580_vm0, %v579_v1  ;;  %v139_v3 = vld [vmem:[%s134_s18] sm:$0xff]  ;;  %v150_v31 = vld [vmem:[%s685_s1 + $0x50] sm:$0x1]  ;;  %v508_v36 = vld [vmem:[%s685_s1 + $0x51] ss:$0 sm:$0xff] }
   0xf   : > { %531 = vmatpush3.msra.mxu0 %v140_v2  ;;  %536 = vmatpush3.msra.mxu1 %v145_v4  ;;  %v254_v32 = vsub.s32 0, %v253_v30  ;;  %v147_v42 = vld [vmem:[%s685_s1 + $0x38] sm:$0xff]  ;;  %v146_v43 = vld [vmem:[%s685_s1 + $0x30] sm:$0xff] }
  0x10   : > { %546 = vmatprep.subr.mxu0 %v579_v1  ;;  %533 = vmatmul.mubr.msk.f32.vlgmr.msra.gmra.mxu0 %vm155_vm1, %v139_v3 }
  0x11   : > { %554 = vmatprep.mubr.msk.f32.mxu0 %vm580_vm0, %v579_v1  ;;  %537 = vmatprep.subr.mxu1 %v579_v1 }
  0x12   : > { %538 = vmatpush3.msra.mxu1 %v144_v5  ;;  %547 = vmatpush3.msra.mxu0 %v149_v40  ;;  %v510_v5 = vld [vmem:[%s685_s1 + $0x53] ss:$0 sm:$0xff] }
  0x13   : > { %539 = vmatprep.subr.mxu1 %v579_v1  ;;  %548 = vmatprep.subr.mxu0 %v579_v1 }
  0x14   : > { %540 = vmatpush3.msra.mxu1 %v143_v6  ;;  %549 = vmatpush3.msra.mxu0 %v148_v41 }
  0x15   : > { %541 = vmatprep.subr.mxu1 %v579_v1  ;;  %550 = vmatprep.subr.mxu0 %v579_v1 }
  0x16   : > { %542 = vmatpush3.msra.mxu1 %v142_v7  ;;  %551 = vmatpush3.msra.mxu0 %v147_v42 }
  0x17   : > { %552 = vmatprep.subr.mxu0 %v579_v1  ;;  %v152_v1 = vld [vmem:[%s685_s1 + $0x52] sm:$0x1] }
  0x18   : > { %553 = vmatpush3.msra.mxu0 %v146_v43 }
  0xd0   : > { %v225_v8 = vpop.f32.mrf.mxu0 }
  0xd1   : > { %v230_v9 = vsel %vm229_vm2, %v225_v8, 0.0 }
  0xd2   : > { %v231_v10 = vrot.slane %v230_v9, 4  ;;  %v534_v11 = vpop.f32.mrf.mxu0 }
  0xd4   : > { %v232_v12 = vadd.f32 %v231_v10, %v230_v9  ;;  %v511_v9 = vld [vmem:[%s685_s1 + $0x54] ss:$0 sm:$0xff] }
  0xd6   : > { %v233_v13 = vrot.slane %v232_v12, 2 }
  0xd8   : > { %v234_v14 = vadd.f32 %v233_v13, %v232_v12 }
  0xda   : > { %v235_v15 = vrot.slane %v234_v14, 1 }
  0xdc   : > { %v236_v16 = vadd.f32 %v235_v15, %v234_v14 }
  0xde   : > { %v238_v17 = vmul.f32 0.125, %v236_v16 }
  0xe0   : > { %v239_v18 = vsub.f32 %v225_v8, %v238_v17 }
  0xe2   : > { %v240_v19 = vmul.f32 %v239_v18, %v239_v18 }
  0xe4   : > { %v241_v20 = vsel %vm229_vm2, %v240_v19, 0.0 }
  0xe5   : > { %v242_v21 = vrot.slane %v241_v20, 4 }
  0xe7   : > { %v243_v22 = vadd.f32 %v242_v21, %v241_v20 }
  0xe9   : > { %v244_v23 = vrot.slane %v243_v22, 2 }
  0xeb   : > { %v245_v24 = vadd.f32 %v244_v23, %v243_v22 }
  0xed   : > { %v246_v25 = vrot.slane %v245_v24, 1 }
  0xef   : > { %v247_v26 = vadd.f32 %v246_v25, %v245_v24 }
  0xf1   : > { %v248_v27 = vmul.f32 0.125, %v247_v26 }
  0xf3   : > { %v249_v28 = vadd.f32 1e-05, %v248_v27 }
  0xf5   : > { %567 = vrsqrt.f32 %v249_v28 }
 0x102   : > { %v568_v33 = vpop.eup %567 }
 0x103   : > { %v251_v34 = vmul.f32 %v568_v33, %v150_v31 }
 0x105   : > { %v255_v35 = vrot.slane %v251_v34, %v254_v32 }
 0x107   : > { %v256_v37 = vmul.f32 %v255_v35, %v239_v18 }
 0x109   : > { %v261_v38 = vadd.f32 %v508_v36, %v256_v37 }
 0x10b   : > { %v262_v39 = vmax.f32 %v261_v38, 0.0 }
 0x10d   : > { %544 = vmatmul.mubr.msk.f32.vlgmr.msra.gmra.mxu1 %vm229_vm2, %v262_v39 }
 0x1cd   : > { %v332_v44 = vpop.f32.mrf.mxu1 }
 0x1ce   : > { %v336_v45 = vsel %vm229_vm2, %v332_v44, 0.0 }
 0x1cf   : > { %v337_v46 = vrot.slane %v336_v45, 4  ;;  %v545_v47 = vpop.f32.mrf.mxu1 }
 0x1d1   : > { %v338_v48 = vadd.f32 %v337_v46, %v336_v45 }
 0x1d3   : > { %v339_v49 = vrot.slane %v338_v48, 2 }
 0x1d5   : > { %v340_v50 = vadd.f32 %v339_v49, %v338_v48 }
 0x1d7   : > { %v341_v51 = vrot.slane %v340_v50, 1 }
 0x1d9   : > { %v342_v52 = vadd.f32 %v341_v51, %v340_v50 }
 0x1db   : > { %v343_v53 = vmul.f32 0.125, %v342_v52 }
 0x1dd   : > { %v344_v54 = vsub.f32 %v332_v44, %v343_v53 }
 0x1df   : > { %v345_v55 = vmul.f32 %v344_v54, %v344_v54 }
 0x1e1   : > { %v346_v56 = vsel %vm229_vm2, %v345_v55, 0.0 }
 0x1e2   : > { %v347_v57 = vrot.slane %v346_v56, 4 }
 0x1e4   : > { %v348_v58 = vadd.f32 %v347_v57, %v346_v56 }
 0x1e6   : > { %v349_v59 = vrot.slane %v348_v58, 2 }
 0x1e8   : > { %v350_v60 = vadd.f32 %v349_v59, %v348_v58 }
 0x1ea   : > { %v351_v61 = vrot.slane %v350_v60, 1 }
 0x1ec   : > { %v352_v62 = vadd.f32 %v351_v61, %v350_v60 }
 0x1ee   : > { %v353_v63 = vmul.f32 0.125, %v352_v62 }
 0x1f0   : > { %v354_v0 = vadd.f32 1e-05, %v353_v63 }
 0x1f2   : > { %569 = vrsqrt.f32 %v354_v0 }
 0x1ff   : > { %v570_v2 = vpop.eup %569 }
 0x200   : > { %v356_v3 = vmul.f32 %v570_v2, %v152_v1 }
 0x202   : > { %v360_v4 = vrot.slane %v356_v3, %v254_v32 }
 0x204   : > { %v361_v6 = vmul.f32 %v360_v4, %v344_v54 }
 0x206   : > { %v366_v7 = vadd.f32 %v510_v5, %v361_v6 }
 0x208   : > { %v367_v8 = vmax.f32 %v366_v7, 0.0 }
 0x20a   : > { %555 = vmatmul.mubr.msk.f32.vlgmr.msra.gmra.mxu0 %vm229_vm2, %v367_v8 }
 0x2ca   : > { %v441_v10 = vpop.f32.mrf.mxu0 }
 0x2cb   : > { %v442_v11 = vadd.f32 %v511_v9, %v441_v10 }
 0x2cc   : > { %v556_v12 = vpop.f32.mrf.mxu0 }
 0x2cd   : > { %446 = vst.msk [vmem:[%s138_s22] sm:$0xff] %vm445_vm3, %v442_v11 }
 0x2ce PF: > { %s12_s9 = sadd.s32 1, %s577_s9  }
 0x2cf   : > { %p9_p4 = scmp.ge.s32.totalorder %s12_s9, 6  }
 0x2d1   :  { %11 = sbr.rel (!%p9_p4) target bundleno = 1 (0x1), region = 58 }

</bundles_post_ra>
